<compile_context>
chip_gen: v6e
topology: v6e:2x2x1
jax: 0.10.0
libtpu: 0.0.40
codegen_flags: <defaults>
</compile_context>

<pallas_src>
import functools
import math

import jax
import jax.numpy as jnp
from jax import lax
from jax.experimental import pallas as pl
from jax.experimental.pallas import tpu as pltpu

# Older jax releases call this TPUCompilerParams; current ones CompilerParams.
_CompilerParams = getattr(pltpu, "CompilerParams", None) or getattr(
    pltpu, "TPUCompilerParams")


# --------------------------- generation / tile helpers -----------------------

def _tpu_generation():
    """Best-effort TPU generation (e.g. 5, 6, 7); 0 if unknown."""
    try:
        kind = jax.devices()[0].device_kind.lower()
    except Exception:
        return 0
    for g in (7, 6, 5, 4, 3, 2):
        if f"v{g}" in kind:
            return g
    return 0


def _vmem_limit_bytes(gen):
    if gen >= 7:              # v7x: 64 MiB physical VMEM -> leave headroom
        return 42 * 1024 * 1024
    if gen in (5, 6):         # v5e / v6e: 128 MiB physical VMEM
        return 80 * 1024 * 1024
    return 48 * 1024 * 1024


def _pick_tile(n, target, multiple=8):
    """Largest multiple-of-`multiple` divisor of n that is <= target (else n)."""
    t = min(n, max(multiple, target))
    t -= t % multiple
    while t >= multiple:
        if n % t == 0:
            return t
        t -= multiple
    return n


def _pick_kv_rows(kh, kw, target_kv):
    """Number of key-grid rows per KV tile: divides kh, keeps tkh*kw 8-aligned."""
    t = min(kh, max(1, target_kv // kw))
    while t >= 1:
        if kh % t == 0 and ((t * kw) % 8 == 0 or t == kh):
            return t
        t -= 1
    return kh


# ------------------------- blocked matmul + bias ----------------------------

def _matmul_bias_kernel(x_ref, w_ref, b_ref, o_ref):
    acc = jnp.dot(x_ref[...], w_ref[...], preferred_element_type=jnp.float32)
    o_ref[...] = (acc + b_ref[...]).astype(o_ref.dtype)


def matmul_bias(x, w, b, *, block_m=None, out_dtype=jnp.bfloat16):
    """(M, K) @ (K, N) + b -> (M, N).  bf16 MXU inputs, f32 accumulation,
    bf16 output (halves HBM writeback of the big QKV tensor)."""
    M, K = x.shape
    N = w.shape[1]
    tm = block_m or _pick_tile(M, 512)
    assert M % tm == 0
    vmem = min(_vmem_limit_bytes(_tpu_generation()), 64 * 1024 * 1024)
    return pl.pallas_call(
        _matmul_bias_kernel,
        out_shape=jax.ShapeDtypeStruct((M, N), out_dtype),
        grid=(M // tm,),
        in_specs=[
            pl.BlockSpec((tm, K), lambda i: (i, 0)),
            pl.BlockSpec((K, N), lambda i: (0, 0)),   # resident weight
            pl.BlockSpec((1, N), lambda i: (0, 0)),   # resident bias
        ],
        out_specs=pl.BlockSpec((tm, N), lambda i: (i, 0)),
        compiler_params=_CompilerParams(
            dimension_semantics=("parallel",),
            vmem_limit_bytes=vmem),
    )(x.astype(jnp.bfloat16), w.astype(jnp.bfloat16),
      b.reshape(1, N).astype(jnp.float32))


# --------------- fused flash attention + output projection ------------------

def _flash_attn_proj_kernel(*refs, scale, kw, tkh, use_rel_pos, exp_dtype):
    if use_rel_pos:
        (q_ref, k_ref, v_ref, rh_ref, rw_ref, wp_ref, bp_ref,
         o_ref, m_scr, l_scr, acc_scr) = refs
    else:
        (q_ref, k_ref, v_ref, wp_ref, bp_ref,
         o_ref, m_scr, l_scr, acc_scr) = refs
        rh_ref = rw_ref = None

    ki = pl.program_id(2)

    @pl.when(ki == 0)
    def _init():
        m_scr[...] = jnp.full(m_scr.shape, -jnp.inf, dtype=m_scr.dtype)
        l_scr[...] = jnp.zeros(l_scr.shape, dtype=l_scr.dtype)
        acc_scr[...] = jnp.zeros(acc_scr.shape, dtype=acc_scr.dtype)

    q = q_ref[...]                       # (nh, tq, hd)   bf16
    k = k_ref[...]                       # (nh, tkv, hd)  bf16
    v = v_ref[...]                       # (nh, tkv, hd)  bf16
    nh, tq, _ = q.shape
    tkv = k.shape[1]

    # scores: contract head_dim, batch over heads (no explicit K^T).
    s = lax.dot_general(q, k, (((2,), (2,)), ((0,), (0,))),
                        preferred_element_type=jnp.float32) * scale

    if use_rel_pos:
        # Decomposed rel-pos bias added per KV tile via small bf16 one-hot
        # "gather-as-matmul" selections, with heads merged into the M dim:
        #   bias[h, i, j] = rel_h[h, i, ki*tkh + j // kw] + rel_w[h, i, j % kw]
        kh_full = rh_ref.shape[-1]
        rh2 = rh_ref[...].reshape(nh * tq, kh_full)           # bf16
        rw2 = rw_ref[...].reshape(nh * tq, kw)                 # bf16
        hrow = lax.broadcasted_iota(jnp.int32, (kh_full, tkv), 0)
        hcol = lax.broadcasted_iota(jnp.int32, (kh_full, tkv), 1)
        sel_h = (hrow == ki * tkh + hcol // kw).astype(jnp.bfloat16)
        wrow = lax.broadcasted_iota(jnp.int32, (kw, tkv), 0)
        wcol = lax.broadcasted_iota(jnp.int32, (kw, tkv), 1)
        sel_w = (wrow == wcol % kw).astype(jnp.bfloat16)
        bias = (jnp.dot(rh2, sel_h, preferred_element_type=jnp.float32)
                + jnp.dot(rw2, sel_w, preferred_element_type=jnp.float32))
        s = s + bias.reshape(nh, tq, tkv)

    m_prev = m_scr[...]
    m_new = jnp.maximum(m_prev, jnp.max(s, axis=-1, keepdims=True))
    alpha = jnp.exp(m_prev - m_new)
    # exp in bf16 on chips with a bf16 EUP (v6e/v7x); f32 on v5e / unknown.
    p = jnp.exp((s - m_new).astype(exp_dtype))
    l_scr[...] = alpha * l_scr[...] + jnp.sum(
        p.astype(jnp.float32), axis=-1, keepdims=True)
    acc_scr[...] = alpha * acc_scr[...] + lax.dot_general(
        p.astype(v.dtype), v, (((2,), (1,)), ((0,), (0,))),
        preferred_element_type=jnp.float32)
    m_scr[...] = m_new

    @pl.when(ki == pl.num_programs(2) - 1)
    def _finalize():
        inv_l = pl.reciprocal(l_scr[...], approx=False)
        ctx = (acc_scr[...] * inv_l).astype(jnp.bfloat16)      # (nh, tq, hd)
        # fused output projection, accumulated per head into one (tq, dim)
        # f32 tile (no (nh, tq, dim) intermediate / cross-head reduce).
        out = jnp.dot(ctx[0], wp_ref[0], preferred_element_type=jnp.float32)
        for h in range(1, nh):
            out = out + jnp.dot(ctx[h], wp_ref[h],
                                preferred_element_type=jnp.float32)
        o_ref[...] = (out + bp_ref[...]).astype(o_ref.dtype)


def flash_attention_proj(q, k, v, rel_h, rel_w, proj_w, proj_b, *,
                         scale, grid_hw, q_tile=None, kv_row_tile=None,
                         exp_in_bf16=None):
    """q,k,v: (B, nh, L, hd).  Returns (B, L, dim) after the output projection."""
    B, nh, L, hd = q.shape
    H, W = grid_hw
    dim = nh * hd
    use_rel_pos = rel_h is not None

    gen = _tpu_generation()
    if exp_in_bf16 is None:
        exp_in_bf16 = gen in (6, 7)      # bf16 EUP; keep f32 on v5e / unknown
    exp_dtype = jnp.bfloat16 if exp_in_bf16 else jnp.float32

    # Generation-aware tile defaults: big q tiles on v5e/v6e (128 MiB VMEM)
    # to cut K/V re-stream traffic; tighter KV tiles on v7x (64 MiB VMEM).
    if q_tile is None:
        q_tile = _pick_tile(L, 256 if gen in (5, 6) else 128)
        if B * (L // q_tile) < 2 and q_tile > 8:
            q_tile = _pick_tile(L, max(8, q_tile // 2))  # keep megacore busy
    tq = q_tile
    tkh = kv_row_tile or _pick_kv_rows(H, W, 256 if gen >= 7 else 512)
    assert L % tq == 0 and H % tkh == 0
    tkv = tkh * W
    nq, nk = L // tq, H // tkh

    qb = q.astype(jnp.bfloat16)
    kb = k.astype(jnp.bfloat16)
    vb = v.astype(jnp.bfloat16)
    wp3 = proj_w.reshape(nh, hd, dim).astype(jnp.bfloat16)
    bp2 = proj_b.reshape(1, dim).astype(jnp.float32)

    in_specs = [
        pl.BlockSpec((None, nh, tq, hd), lambda b, qi, ki: (b, 0, qi, 0)),
        pl.BlockSpec((None, nh, tkv, hd), lambda b, qi, ki: (b, 0, ki, 0)),
        pl.BlockSpec((None, nh, tkv, hd), lambda b, qi, ki: (b, 0, ki, 0)),
    ]
    args = [qb, kb, vb]
    if use_rel_pos:
        in_specs += [
            pl.BlockSpec((None, nh, tq, H), lambda b, qi, ki: (b, 0, qi, 0)),
            pl.BlockSpec((None, nh, tq, W), lambda b, qi, ki: (b, 0, qi, 0)),
        ]
        args += [rel_h.astype(jnp.bfloat16), rel_w.astype(jnp.bfloat16)]
    in_specs += [
        pl.BlockSpec((nh, hd, dim), lambda b, qi, ki: (0, 0, 0)),   # resident
        pl.BlockSpec((1, dim), lambda b, qi, ki: (0, 0)),           # resident
    ]
    args += [wp3, bp2]

    kernel = functools.partial(_flash_attn_proj_kernel, scale=scale, kw=W,
                               tkh=tkh, use_rel_pos=use_rel_pos,
                               exp_dtype=exp_dtype)
    return pl.pallas_call(
        kernel,
        out_shape=jax.ShapeDtypeStruct((B, L, dim), jnp.float32),
        grid=(B, nq, nk),
        in_specs=in_specs,
        out_specs=pl.BlockSpec((None, tq, dim), lambda b, qi, ki: (b, qi, 0)),
        scratch_shapes=[
            pltpu.VMEM((nh, tq, 1), jnp.float32),   # running max
            pltpu.VMEM((nh, tq, 1), jnp.float32),   # running sum
            pltpu.VMEM((nh, tq, hd), jnp.float32),  # context accumulator
        ],
        compiler_params=_CompilerParams(
            dimension_semantics=("parallel", "parallel", "arbitrary"),
            vmem_limit_bytes=_vmem_limit_bytes(gen)),
    )(*args)


# --------------------------- rel-pos (JAX glue) ------------------------------

def get_rel_pos(q_size, k_size, rel_pos):
    """JAX port of get_rel_pos (linear resize + relative-coordinate gather)."""
    max_rel_dist = int(2 * max(q_size, k_size) - 1)
    if rel_pos.shape[0] != max_rel_dist:
        L, _ = rel_pos.shape
        scale = L / max_rel_dist
        pos = jnp.maximum((jnp.arange(max_rel_dist) + 0.5) * scale - 0.5, 0.0)
        lo = jnp.clip(jnp.floor(pos).astype(jnp.int32), 0, L - 1)
        hi = jnp.clip(lo + 1, 0, L - 1)
        frac = (pos - lo.astype(pos.dtype))[:, None]
        rel_pos_resized = rel_pos[lo] * (1.0 - frac) + rel_pos[hi] * frac
    else:
        rel_pos_resized = rel_pos
    q_coords = jnp.arange(q_size)[:, None] * max(k_size / q_size, 1.0)
    k_coords = jnp.arange(k_size)[None, :] * max(q_size / k_size, 1.0)
    rel_coords = q_coords - k_coords + (k_size - 1) * max(q_size / k_size, 1.0)
    return rel_pos_resized[rel_coords.astype(jnp.int32)]


# ------------------------------ forward pass ---------------------------------

def attention_forward(x, params, *, num_heads, use_rel_pos=False,
                      q_tile=None, kv_row_tile=None, exp_in_bf16=None):
    """Forward of the SAM `Attention` module.  x: (B, H, W, dim) -> same shape."""
    B, H, W, dim = x.shape
    assert dim % num_heads == 0
    nh = num_heads
    hd = dim // nh
    scale = hd ** -0.5
    L = H * W

    # 1) QKV projection (blocked Pallas matmul+bias), bf16 output.
    qkv = matmul_bias(x.reshape(B * L, dim), params["qkv_w"], params["qkv_b"])
    # TODO(synk): the head split below is one fused bf16 XLA transpose; folding
    # it into the attention kernel's BlockSpecs needs non-leading-batch
    # dot_generals in Mosaic and is left for a later revision.
    qkv = qkv.reshape(B, L, 3, nh, hd).transpose(2, 0, 3, 1, 4)  # (3,B,nh,L,hd)
    q, k, v = qkv[0], qkv[1], qkv[2]                             # bf16

    # 2) Decomposed rel-pos projections (small, plain-JAX, f32 accumulate).
    if use_rel_pos:
        Rh = get_rel_pos(H, H, params["rel_pos_h"])          # (H, H, hd)
        Rw = get_rel_pos(W, W, params["rel_pos_w"])          # (W, W, hd)
        rq = q.astype(jnp.float32).reshape(B * nh, H, W, hd)
        rel_h = jnp.einsum("bhwc,hkc->bhwk", rq, Rh).reshape(B, nh, L, H)
        rel_w = jnp.einsum("bhwc,wkc->bhwk", rq, Rw).reshape(B, nh, L, W)
    else:
        rel_h = rel_w = None

    # 3) Fused flash attention + output projection (single Pallas kernel).
    out = flash_attention_proj(q, k, v, rel_h, rel_w,
                               params["proj_w"], params["proj_b"],
                               scale=scale, grid_hw=(H, W),
                               q_tile=q_tile, kv_row_tile=kv_row_tile,
                               exp_in_bf16=exp_in_bf16)
    return out.reshape(B, H, W, dim)


# --------------------------- pure-JAX reference ------------------------------

def attention_reference(x, params, *, num_heads, use_rel_pos=False):
    B, H, W, dim = x.shape
    nh = num_heads
    hd = dim // nh
    scale = hd ** -0.5
    L = H * W
    qkv = x.reshape(B * L, dim) @ params["qkv_w"] + params["qkv_b"]
    qkv = qkv.reshape(B, L, 3, nh, hd).transpose(2, 0, 3, 1, 4)
    qkv = qkv.reshape(3, B * nh, L, hd)
    q, k, v = qkv[0], qkv[1], qkv[2]
    attn = (q * scale) @ jnp.swapaxes(k, -2, -1)
    if use_rel_pos:
        Rh = get_rel_pos(H, H, params["rel_pos_h"])
        Rw = get_rel_pos(W, W, params["rel_pos_w"])
        rq = q.reshape(B * nh, H, W, hd)
        rel_h = jnp.einsum("bhwc,hkc->bhwk", rq, Rh)
        rel_w = jnp.einsum("bhwc,wkc->bhwk", rq, Rw)
        attn = (attn.reshape(B * nh, H, W, H, W)
                + rel_h[:, :, :, :, None]
                + rel_w[:, :, :, None, :]).reshape(B * nh, L, L)
    attn = jax.nn.softmax(attn, axis=-1)
    out = (attn @ v).reshape(B, nh, H, W, hd).transpose(0, 2, 3, 1, 4)
    out = out.reshape(B, H, W, dim)
    return out @ params["proj_w"] + params["proj_b"]


# ----------------------------------- main ------------------------------------

if __name__ == "__main__":
    B, H, W = 2, 8, 8
    dim, num_heads = 128, 2          # head_dim = 64, matching real SAM heads
    hd = dim // num_heads
    use_rel_pos = True

    key = jax.random.PRNGKey(0)
    kx, kw1, kb1, kw2, kb2, krh, krw = jax.random.split(key, 7)
    params = dict(
        qkv_w=jax.random.normal(kw1, (dim, 3 * dim), jnp.float32) / math.sqrt(dim),
        qkv_b=jax.random.normal(kb1, (3 * dim,), jnp.float32) * 0.02,
        proj_w=jax.random.normal(kw2, (dim, dim), jnp.float32) / math.sqrt(dim),
        proj_b=jax.random.normal(kb2, (dim,), jnp.float32) * 0.02,
        rel_pos_h=jax.random.normal(krh, (2 * H - 1, hd), jnp.float32) * 0.2,
        rel_pos_w=jax.random.normal(krw, (2 * W - 1, hd), jnp.float32) * 0.2,
    )
    x = jax.random.normal(kx, (B, H, W, dim), jnp.float32)

    # Small tiles so the test exercises multiple q-tiles and multiple KV steps
    # of the online-softmax path (2 x 2 x 2 grid).
    out = attention_forward(x, params, num_heads=num_heads,
                            use_rel_pos=use_rel_pos, q_tile=32, kv_row_tile=4)
    jax.block_until_ready(out)
    assert out.shape == (B, H, W, dim), out.shape
    assert out.dtype == jnp.float32

    ref = attention_reference(x, params, num_heads=num_heads,
                              use_rel_pos=use_rel_pos)
    max_err = float(jnp.max(jnp.abs(out - ref)))
    mean_err = float(jnp.mean(jnp.abs(out - ref)))
    # bf16 MXU inputs (+ bf16 EUP exp on v6e/v7x) => loose absolute match.
    assert max_err < 2e-1, f"max abs error vs reference: {max_err}"
    assert mean_err < 5e-2, f"mean abs error vs reference: {mean_err}"
    print("KERNEL_OK")
</pallas_src>

<mosaic_0001>
module attributes {stable_mosaic.version = 11 : i64} {
  func.func @_matmul_bias_kernel(%arg0: i32, %arg1: memref<128x128xbf16, #tpu.memory_space<vmem>>, %arg2: memref<128x384xbf16, #tpu.memory_space<vmem>>, %arg3: memref<1x384xf32, #tpu.memory_space<vmem>>, %arg4: memref<128x384xbf16, #tpu.memory_space<vmem>>) attributes {dimension_semantics = [#tpu.dimension_semantics<parallel>], iteration_bounds = array<i64: 1>, scalar_prefetch = 0 : i64, scratch_operands = 0 : i64, tpu.core_type = #tpu.core_type<tc>, window_params = [{transform_indices = @transform_0, window_bounds = array<i64: 128, 128>}, {pipeline_mode = #tpu.pipeline_mode<synchronous>, transform_indices = @transform_1, window_bounds = array<i64: 128, 384>}, {pipeline_mode = #tpu.pipeline_mode<synchronous>, transform_indices = @transform_2, window_bounds = array<i64: 1, 384>}, {transform_indices = @transform_3, window_bounds = array<i64: 128, 384>}]} {
    %c0 = arith.constant 0 : index
    %c0_0 = arith.constant 0 : index
    %0 = vector.load %arg1[%c0, %c0_0] : memref<128x128xbf16, #tpu.memory_space<vmem>>, vector<128x128xbf16>
    %c0_1 = arith.constant 0 : index
    %c0_2 = arith.constant 0 : index
    %1 = vector.load %arg2[%c0_1, %c0_2] : memref<128x384xbf16, #tpu.memory_space<vmem>>, vector<128x384xbf16>
    %cst = arith.constant dense<0.000000e+00> : vector<128x384xf32>
    %2 = tpu.matmul %0, %1, %cst {dimension_numbers = #tpu.dot_dimension_numbers<[1], [0], [0], [1], [0, 0, 1, 1], [], []>} : vector<128x128xbf16>, vector<128x384xbf16>, vector<128x384xf32> -> vector<128x384xf32>
    %c0_3 = arith.constant 0 : index
    %c0_4 = arith.constant 0 : index
    %3 = vector.load %arg3[%c0_3, %c0_4] : memref<1x384xf32, #tpu.memory_space<vmem>>, vector<1x384xf32>
    %4 = vector.broadcast %3 : vector<1x384xf32> to vector<128x384xf32>
    %5 = arith.addf %2, %4 : vector<128x384xf32>
    %6 = arith.truncf %5 : vector<128x384xf32> to vector<128x384xbf16>
    %c0_5 = arith.constant 0 : index
    %c0_6 = arith.constant 0 : index
    %7 = vector.load %arg4[%c0_5, %c0_6] : memref<128x384xbf16, #tpu.memory_space<vmem>>, vector<128x384xbf16>
    tpu.vector_store %arg4[%c0_5, %c0_6], %6 {strides = array<i32>} : memref<128x384xbf16, #tpu.memory_space<vmem>>, vector<128x384xbf16>,
    return
  }
  func.func @transform_0(%arg0: i32) -> (i32, i32) {
    %c0_i32 = arith.constant 0 : i32
    %c0_i32_0 = arith.constant 0 : i32
    return %arg0, %c0_i32 : i32, i32
  }
  func.func @transform_1(%arg0: i32) -> (i32, i32) {
    %c0_i32 = arith.constant 0 : i32
    %c0_i32_0 = arith.constant 0 : i32
    %c0_i32_1 = arith.constant 0 : i32
    return %c0_i32, %c0_i32_0 : i32, i32
  }
  func.func @transform_2(%arg0: i32) -> (i32, i32) {
    %c0_i32 = arith.constant 0 : i32
    %c0_i32_0 = arith.constant 0 : i32
    %c0_i32_1 = arith.constant 0 : i32
    return %c0_i32, %c0_i32_0 : i32, i32
  }
  func.func @transform_3(%arg0: i32) -> (i32, i32) {
    %c0_i32 = arith.constant 0 : i32
    %c0_i32_0 = arith.constant 0 : i32
    return %arg0, %c0_i32 : i32, i32
  }
}

</mosaic_0001>

<bundles_post_ra>
// kernel: tpu_custom_call.1
= control target key start
LH: loop header
LB: loop body
LE: loop exit
PB: predicated region body
PF: predicated region fallthrough
CT: control target
= control target key end

     0   :  { %8 = vsyncpa [#allocation3], 0  ;;  %s1071_s0 = inlined_call_operand.hbm [shape: bf16[128,128], index: 0, kind: input, shape index: {}]   ;;  %s1072_s1 = inlined_call_operand.hbm [shape: bf16[128,384], index: 1, kind: input, shape index: {}]   ;;  %s1073_s2 = inlined_call_operand.vmem [shape: f32[1,384], index: 2, kind: input, shape index: {}]   ;;  %s1074_s3 = inlined_call_operand.hbm [shape: bf16[128,384], index: 3, kind: output, shape index: {}]  }
   0x1   :  { %9 = vsyncpa [#allocation6], 0 }
   0x2   :  { %10 = vsyncpa [#allocation4], 0  ;;  %s963_s12 = smov [#allocation2]  }
   0x3   :  { %s16_s13 = sshll.u32 %s963_s12, 4  ;;  %s17_s13 = int_to_ptr.vmem [resolvable:$true] %s16_s13 }
   0x4   :  { %s905_s14 = scalar_lea.vmem %s17_s13, 1024  ;;  %p910_p1 = scmp.lt.s32.totalorder %s17_s13, %s17_s13 }
   0x5   :  { %p906_p0 = scmp.ne.s32.totalorder %s17_s13, %s905_s14  ;;  %p911_p2 = scmp.lt.s32.totalorder %s905_s14, %s905_s14 }
   0x7   :  { %p912_p3 = por %p911_p2, %p910_p1 }
   0x9   :  { %p913_p4 = pnand %p912_p3, %p906_p0 }
   0xb   :  { %916 = shalt.err (!%p913_p4)
}
   0xc   :  { %s964_s15 = smov 64   ;;  %s965_s16 = smov 4  }
   0xd   :  { %22 = dma.hbm_to_vmem [thread:$0]  %s1071_s0, 1024, %s17_s13, [#allocation3], %s964_s15, %s964_s15, %s965_s16  }
   0xe   :  { %s966_s19 = smov [#allocation5]  }
   0xf   :  { %s28_s20 = sshll.u32 %s966_s19, 4  ;;  %s29_s20 = int_to_ptr.vmem [resolvable:$true] %s28_s20 }
  0x10   :  { %s925_s21 = scalar_lea.vmem %s29_s20, 3072  ;;  %p930_p6 = scmp.lt.s32.totalorder %s29_s20, %s29_s20 }
  0x11   :  { %p926_p5 = scmp.ne.s32.totalorder %s29_s20, %s925_s21  ;;  %p931_p7 = scmp.lt.s32.totalorder %s925_s21, %s925_s21 }
  0x13   :  { %p932_p8 = por %p931_p7, %p930_p6 }
  0x15   :  { %p933_p9 = pnand %p932_p8, %p926_p5 }
  0x17   :  { %936 = shalt.err (!%p933_p9)
}
  0x18   :  { %s967_s22 = smov 192   ;;  %s968_s23 = smov 12  }
  0x19   :  { %34 = dma.hbm_to_vmem [thread:$0]  %s1072_s1, 3072, %s29_s20, [#allocation6], %s967_s22, %s967_s22, %s968_s23  }
  0x1a   :  { %957 = dma.done.wait [#allocation3], 1024  }
  0x1b   :  { %958 = vsyncadd [#allocation3], 4294966272 }
  0x1c   :  { %959 = dma.done.wait [#allocation6], 3072  }
  0x1d   :  { %960 = vsyncadd [#allocation6], 4294964224  ;;  %v969_v0 = vmov 0   ;;  %v857_v1 = vld [vmem:[#allocation5 + $0xac] ss:$12 sps:$4 sm:$0xff]   ;;  %v883_v12 = vld [vmem:[#allocation2] sm:$0xff]   ;;  %v94_v33 = vlaneseq }
  0x1e   :  { %317 = vmatprep.mubr.bf16.mxu0 %v969_v0  ;;  %v859_v2 = vld [vmem:[#allocation5 + $0xa8] ss:$12 sps:$4 sm:$0xff]   ;;  %285 = vmatprep.subr.bf16.mxu0 %v857_v1  ;;  %v862_v4 = vld [vmem:[#allocation5 + $0x90] ss:$12 sps:$4 sm:$0xff]   ;;  %v865_v6 = vld [vmem:[#allocation5 + $0x78] ss:$12 sps:$4 sm:$0xff]  }
  0x1f   :  { %v860_v3 = vld [vmem:[#allocation5 + $0x94] ss:$12 sps:$4 sm:$0xff]   ;;  %286 = vmatpush1.bf16.msra.mxu0 %v859_v2  ;;  %v863_v5 = vld [vmem:[#allocation5 + $0x7c] ss:$12 sps:$4 sm:$0xff]   ;;  %v866_v7 = vld [vmem:[#allocation5 + $0x64] ss:$12 sps:$4 sm:$0xff]   ;;  %833 = vmatprep.mubr.bf16.mxu1 %v883_v12 }
  0x20   :  { %287 = vmatprep.subr.bf16.mxu0 %v860_v3  ;;  %v878_v8 = vld [vmem:[#allocation5 + $0xb0] ss:$12 sps:$4 sm:$0xff]   ;;  %v868_v9 = vld [vmem:[#allocation5 + $0x60] ss:$12 sps:$4 sm:$0xff]   ;;  %v882_v11 = vld [vmem:[#allocation5 + $0x98] ss:$12 sps:$4 sm:$0xff]  }
  0x21   :  { %v869_v10 = vld [vmem:[#allocation5 + $0x4c] ss:$12 sps:$4 sm:$0xff]   ;;  %817 = vmatprep.subr.bf16.mxu1 %v878_v8  ;;  %v871_v14 = vld [vmem:[#allocation5 + $0x48] ss:$12 sps:$4 sm:$0xff]   ;;  %v874_v17 = vld [vmem:[#allocation5 + $0x30] ss:$12 sps:$4 sm:$0xff]  }
  0x22   :  { %818 = vmatpush3.bf16.msra.mxu1 %v878_v8  ;;  %v884_v13 = vld [vmem:[#allocation5 + $0x80] ss:$12 sps:$4 sm:$0xff]   ;;  %v885_v16 = vld [vmem:[#allocation5 + $0x68] ss:$12 sps:$4 sm:$0xff]   ;;  %v887_v19 = vld [vmem:[#allocation5 + $0x50] ss:$12 sps:$4 sm:$0xff]  }
  0x23   :  { %288 = vmatpush1.bf16.msra.mxu0 %v862_v4  ;;  %819 = vmatprep.subr.bf16.mxu1 %v882_v11  ;;  %v872_v15 = vld [vmem:[#allocation5 + $0x34] ss:$12 sps:$4 sm:$0xff]   ;;  %v875_v18 = vld [vmem:[#allocation5 + $0x1c] ss:$12 sps:$4 sm:$0xff]   ;;  %v877_v20 = vld [vmem:[#allocation5 + $0x18] ss:$12 sps:$4 sm:$0xff]  }
  0x24   :  { %289 = vmatprep.subr.bf16.mxu0 %v863_v5  ;;  %v879_v21 = vld [vmem:[#allocation5 + $0x4] ss:$12 sps:$4 sm:$0xff]   ;;  %v881_v23 = vld [vmem:[#allocation5] ss:$12 sps:$4 sm:$0xff]   ;;  %v891_v25 = vld [vmem:[#allocation5 + $0x8] ss:$12 sps:$4 sm:$0xff]  }
  0x25   :  { %v888_v22 = vld [vmem:[#allocation5 + $0x38] ss:$12 sps:$4 sm:$0xff]   ;;  %v890_v24 = vld [vmem:[#allocation5 + $0x20] ss:$12 sps:$4 sm:$0xff]   ;;  %v889_v27 = vld [vmem:[#allocation2 + $0x10] sm:$0xff]   ;;  %v95_v34 = vshrl.u32 %v94_v33, 7 }
  0x26   :  { %820 = vmatpush3.bf16.msra.mxu1 %v882_v11  ;;  %v886_v26 = vld [vmem:[#allocation2 + $0x8] sm:$0xff]   ;;  %v892_v28 = vld [vmem:[#allocation2 + $0x18] sm:$0xff]   ;;  %v893_v29 = vld [vmem:[#allocation2 + $0x20] sm:$0xff]  }
  0x27   :  { %290 = vmatpush1.bf16.msra.mxu0 %v865_v6  ;;  %821 = vmatprep.subr.bf16.mxu1 %v884_v13  ;;  %v895_v30 = vld [vmem:[#allocation2 + $0x30] sm:$0xff]   ;;  %v894_v31 = vld [vmem:[#allocation2 + $0x28] sm:$0xff]   ;;  %v896_v32 = vld [vmem:[#allocation2 + $0x38] sm:$0xff]   ;;  %v96_v35 = vsub.s32 0, %v95_v34  ;;  %v100_v36 = vsub.s32 1, %v95_v34  ;;  %v104_v44 = vsub.s32 2, %v95_v34 }
  0x28   :  { %291 = vmatprep.subr.bf16.mxu0 %v866_v7  ;;  %v92_v37 = vld [vmem:[%s1073_s2] sm:$0x7]  ;;  %s970_s2 = smov [#allocation7]  }
  0x29   :  { %v1011_v38 = vrot.slane %v92_v37, %v96_v35  ;;  %v1013_v39 = vrot.slane %v92_v37, %v100_v36  ;;  %v1019_v50 = vrot.slane %v92_v37, %v104_v44  ;;  %s692_s26 = sshll.u32 %s970_s2, 4  ;;  %s693_s26 = int_to_ptr.vmem [resolvable:$true] %s692_s26 }
  0x2a   :  { %822 = vmatpush3.bf16.msra.mxu1 %v884_v13  ;;  %s937_s27 = scalar_lea.vmem %s693_s26, 3072  ;;  %p942_p11 = scmp.lt.s32.totalorder %s693_s26, %s693_s26 }
  0x2b   :  { %292 = vmatpush1.bf16.msra.mxu0 %v868_v9  ;;  %823 = vmatprep.subr.bf16.mxu1 %v885_v16  ;;  %p938_p10 = scmp.ne.s32.totalorder %s693_s26, %s937_s27  ;;  %p943_p12 = scmp.lt.s32.totalorder %s937_s27, %s937_s27 }
  0x2c   :  { %293 = vmatprep.subr.bf16.mxu0 %v869_v10 }
  0x2d   :  { %p944_p13 = por %p943_p12, %p942_p11 }
  0x2e   :  { %824 = vmatpush3.bf16.msra.mxu1 %v885_v16 }
  0x2f   :  { %294 = vmatpush1.bf16.msra.mxu0 %v871_v14  ;;  %825 = vmatprep.subr.bf16.mxu1 %v887_v19  ;;  %p945_p0 = pnand %p944_p13, %p938_p10 }
  0x30   :  { %295 = vmatprep.subr.bf16.mxu0 %v872_v15 }
  0x32   :  { %826 = vmatpush3.bf16.msra.mxu1 %v887_v19 }
  0x33   :  { %296 = vmatpush1.bf16.msra.mxu0 %v874_v17  ;;  %827 = vmatprep.subr.bf16.mxu1 %v888_v22 }
  0x34   :  { %297 = vmatprep.subr.bf16.mxu0 %v875_v18 }
  0x36   :  { %828 = vmatpush3.bf16.msra.mxu1 %v888_v22 }
  0x37   :  { %298 = vmatpush1.bf16.msra.mxu0 %v877_v20  ;;  %829 = vmatprep.subr.bf16.mxu1 %v890_v24 }
  0x38   :  { %299 = vmatprep.subr.bf16.mxu0 %v879_v21 }
  0x3a   :  { %830 = vmatpush3.bf16.msra.mxu1 %v890_v24 }
  0x3b   :  { %300 = vmatpush1.bf16.msra.mxu0 %v881_v23  ;;  %831 = vmatprep.subr.bf16.mxu1 %v891_v25 }
  0x3e   :  { %318 = vmatmul.mubr.bf16.vlgmr.msra.gmra.mxu0 %v883_v12  ;;  %832 = vmatpush3.bf16.msra.mxu1 %v891_v25 }
  0x3f   :  { %327 = vmatprep.mubr.bf16.mxu0 %v969_v0 }
  0x41   :  { %834 = vmatmul.mubr.bf16.vlgmr.msra.gmra.mxu1 %v886_v26 }
  0x42   :  { %837 = vmatprep.mubr.bf16.mxu1 %v889_v27 }
  0x46   :  { %328 = vmatmul.mubr.bf16.gmra.mxu0 %v886_v26 }
  0x47   :  { %337 = vmatprep.mubr.bf16.mxu0 %v969_v0 }
  0x49   :  { %838 = vmatmul.mubr.bf16.gmra.mxu1 %v892_v28 }
  0x4a   :  { %841 = vmatprep.mubr.bf16.mxu1 %v893_v29 }
  0x4e   :  { %338 = vmatmul.mubr.bf16.gmra.mxu0 %v889_v27 }
  0x4f   :  { %347 = vmatprep.mubr.bf16.mxu0 %v969_v0 }
  0x51   :  { %842 = vmatmul.mubr.bf16.gmra.mxu1 %v894_v31 }
  0x52   :  { %845 = vmatprep.mubr.bf16.mxu1 %v895_v30 }
  0x56   :  { %348 = vmatmul.mubr.bf16.gmra.mxu0 %v892_v28 }
  0x57   :  { %357 = vmatprep.mubr.bf16.mxu0 %v969_v0 }
  0x59   :  { %846 = vmatmul.mubr.bf16.gmra.mxu1 %v896_v32 }
  0x5e   :  { %358 = vmatmul.mubr.bf16.gmra.mxu0 %v893_v29 }
  0x5f   :  { %367 = vmatprep.mubr.bf16.mxu0 %v969_v0 }
  0x66   :  { %368 = vmatmul.mubr.bf16.gmra.mxu0 %v894_v31 }
  0x67   :  { %377 = vmatprep.mubr.bf16.mxu0 %v969_v0 }
  0x6e   :  { %378 = vmatmul.mubr.bf16.gmra.mxu0 %v895_v30 }
  0x6f   :  { %387 = vmatprep.mubr.bf16.mxu0 %v969_v0 }
  0x76   :  { %388 = vmatmul.mubr.bf16.gmra.mxu0 %v896_v32 }
  0xfe   :  { %v319_v40 = vpop.f32.mrf.mxu0 }
  0xff   :  { %v320_v42 = vadd.f32 %v319_v40, %v1011_v38 }
 0x100   :  { %v321_v41 = vpop.f32.mrf.mxu0 }
 0x101   :  { %v322_v43 = vadd.f32 %v321_v41, %v1013_v39  ;;  %v835_v54 = vpop.f32.mrf.mxu1 }
 0x102   :  { %v323_v45 = vpop.f32.mrf.mxu0  ;;  %v441_v57 = vadd.f32 %v835_v54, %v1019_v50 }
 0x103   :  { %v769_v46 = vpack.c.bf16 %v322_v43, %v320_v42  ;;  %v324_v48 = vadd.f32 %v323_v45, %v1011_v38  ;;  %v432_v59 = vpop.f32.mrf.mxu1 }
 0x104   :  { %v325_v47 = vpop.f32.mrf.mxu0  ;;  %v774_v61 = vpack.c.bf16 %v441_v57, %v441_v57  ;;  %v433_v62 = vadd.f32 %v432_v59, %v1019_v50 }
 0x105   :  { %655 = vst [vmem:[#allocation7] sm:$0xff] %v769_v46  ;;  %v326_v49 = vadd.f32 %v325_v47, %v1013_v39  ;;  %v836_v0 = vpop.f32.mrf.mxu1 }
 0x106   :  { %v329_v51 = vpop.f32.mrf.mxu0  ;;  %660 = vst [vmem:[#allocation7 + $0x20] sm:$0xf] %v774_v61  ;;  %v770_v3 = vpack.c.bf16 %v433_v62, %v433_v62  ;;  %v444_v4 = vadd.f32 %v836_v0, %v1019_v50 }
 0x107   :  { %v771_v52 = vpack.c.bf16 %v326_v49, %v324_v48  ;;  %v330_v55 = vadd.f32 %v329_v51, %v1011_v38  ;;  %v435_v6 = vpop.f32.mrf.mxu1 }
 0x108   :  { %v331_v53 = vpop.f32.mrf.mxu0  ;;  %656 = vst [vmem:[#allocation7 + $0x8] sm:$0xf] %v770_v3  ;;  %v776_v8 = vpack.c.bf16 %v444_v4, %v444_v4  ;;  %v436_v9 = vadd.f32 %v435_v6, %v1019_v50 }
 0x109   :  { %657 = vst [vmem:[#allocation7 + $0xc] sm:$0xff] %v771_v52  ;;  %v332_v56 = vadd.f32 %v331_v53, %v1013_v39  ;;  %v839_v11 = vpop.f32.mrf.mxu1 }
 0x10a   :  { %v333_v58 = vpop.f32.mrf.mxu0  ;;  %662 = vst [vmem:[#allocation7 + $0x2c] sm:$0xf] %v776_v8  ;;  %v772_v14 = vpack.c.bf16 %v436_v9, %v436_v9  ;;  %v457_v15 = vadd.f32 %v839_v11, %v1019_v50 }
 0x10b   :  { %v773_v60 = vpack.c.bf16 %v332_v56, %v330_v55  ;;  %v334_v1 = vadd.f32 %v333_v58, %v1011_v38  ;;  %v448_v17 = vpop.f32.mrf.mxu1 }
 0x10c   :  { %v335_v63 = vpop.f32.mrf.mxu0  ;;  %658 = vst [vmem:[#allocation7 + $0x14] sm:$0xf] %v772_v14  ;;  %v782_v19 = vpack.c.bf16 %v457_v15, %v457_v15  ;;  %v449_v20 = vadd.f32 %v448_v17, %v1019_v50 }
 0x10d   :  { %659 = vst [vmem:[#allocation7 + $0x18] sm:$0xff] %v773_v60  ;;  %v336_v2 = vadd.f32 %v335_v63, %v1013_v39  ;;  %v840_v22 = vpop.f32.mrf.mxu1 }
 0x10e   :  { %v339_v5 = vpop.f32.mrf.mxu0  ;;  %668 = vst [vmem:[#allocation7 + $0x50] sm:$0xf] %v782_v19  ;;  %v778_v25 = vpack.c.bf16 %v449_v20, %v449_v20  ;;  %v460_v26 = vadd.f32 %v840_v22, %v1019_v50 }
 0x10f   :  { %v775_v7 = vpack.c.bf16 %v336_v2, %v334_v1  ;;  %v340_v12 = vadd.f32 %v339_v5, %v1011_v38  ;;  %v451_v28 = vpop.f32.mrf.mxu1 }
 0x110   :  { %v341_v10 = vpop.f32.mrf.mxu0  ;;  %664 = vst [vmem:[#allocation7 + $0x38] sm:$0xf] %v778_v25  ;;  %v784_v30 = vpack.c.bf16 %v460_v26, %v460_v26  ;;  %v452_v31 = vadd.f32 %v451_v28, %v1019_v50 }
 0x111   :  { %661 = vst [vmem:[#allocation7 + $0x24] sm:$0xff] %v775_v7  ;;  %v342_v13 = vadd.f32 %v341_v10, %v1013_v39  ;;  %v843_v33 = vpop.f32.mrf.mxu1 }
 0x112   :  { %v343_v16 = vpop.f32.mrf.mxu0  ;;  %670 = vst [vmem:[#allocation7 + $0x5c] sm:$0xf] %v784_v30  ;;  %v780_v36 = vpack.c.bf16 %v452_v31, %v452_v31  ;;  %v473_v37 = vadd.f32 %v843_v33, %v1019_v50 }
 0x113   :  { %v777_v18 = vpack.c.bf16 %v342_v13, %v340_v12  ;;  %v344_v23 = vadd.f32 %v343_v16, %v1011_v38  ;;  %v464_v41 = vpop.f32.mrf.mxu1 }
 0x114   :  { %v345_v21 = vpop.f32.mrf.mxu0  ;;  %666 = vst [vmem:[#allocation7 + $0x44] sm:$0xf] %v780_v36  ;;  %v790_v43 = vpack.c.bf16 %v473_v37, %v473_v37  ;;  %v465_v44 = vadd.f32 %v464_v41, %v1019_v50 }
 0x115   :  { %663 = vst [vmem:[#allocation7 + $0x30] sm:$0xff] %v777_v18  ;;  %v346_v24 = vadd.f32 %v345_v21, %v1013_v39  ;;  %v844_v46 = vpop.f32.mrf.mxu1 }
 0x116   :  { %v349_v27 = vpop.f32.mrf.mxu0  ;;  %676 = vst [vmem:[#allocation7 + $0x80] sm:$0xf] %v790_v43  ;;  %v786_v49 = vpack.c.bf16 %v465_v44, %v465_v44  ;;  %v476_v51 = vadd.f32 %v844_v46, %v1019_v50 }
 0x117   :  { %v779_v29 = vpack.c.bf16 %v346_v24, %v344_v23  ;;  %v350_v34 = vadd.f32 %v349_v27, %v1011_v38  ;;  %v467_v53 = vpop.f32.mrf.mxu1 }
 0x118   :  { %v351_v32 = vpop.f32.mrf.mxu0  ;;  %672 = vst [vmem:[#allocation7 + $0x68] sm:$0xf] %v786_v49  ;;  %v792_v55 = vpack.c.bf16 %v476_v51, %v476_v51  ;;  %v468_v56 = vadd.f32 %v467_v53, %v1019_v50 }
 0x119   :  { %665 = vst [vmem:[#allocation7 + $0x3c] sm:$0xff] %v779_v29  ;;  %v352_v35 = vadd.f32 %v351_v32, %v1013_v39  ;;  %v847_v58 = vpop.f32.mrf.mxu1 }
 0x11a   :  { %v353_v40 = vpop.f32.mrf.mxu0  ;;  %678 = vst [vmem:[#allocation7 + $0x8c] sm:$0xf] %v792_v55  ;;  %v788_v61 = vpack.c.bf16 %v468_v56, %v468_v56  ;;  %v489_v62 = vadd.f32 %v847_v58, %v1019_v50 }
 0x11b   :  { %v781_v42 = vpack.c.bf16 %v352_v35, %v350_v34  ;;  %v354_v47 = vadd.f32 %v353_v40, %v1011_v38  ;;  %v480_v0 = vpop.f32.mrf.mxu1 }
 0x11c   :  { %v355_v45 = vpop.f32.mrf.mxu0  ;;  %674 = vst [vmem:[#allocation7 + $0x74] sm:$0xf] %v788_v61  ;;  %v798_v2 = vpack.c.bf16 %v489_v62, %v489_v62  ;;  %v481_v3 = vadd.f32 %v480_v0, %v1019_v50 }
 0x11d   :  { %667 = vst [vmem:[#allocation7 + $0x48] sm:$0xff] %v781_v42  ;;  %v356_v48 = vadd.f32 %v355_v45, %v1013_v39  ;;  %v848_v5 = vpop.f32.mrf.mxu1 }
 0x11e   :  { %v359_v52 = vpop.f32.mrf.mxu0  ;;  %684 = vst [vmem:[#allocation7 + $0xb0] sm:$0xf] %v798_v2  ;;  %v794_v8 = vpack.c.bf16 %v481_v3, %v481_v3  ;;  %v492_v9 = vadd.f32 %v848_v5, %v1019_v50 }
 0x11f   :  { %v783_v54 = vpack.c.bf16 %v356_v48, %v354_v47  ;;  %v360_v59 = vadd.f32 %v359_v52, %v1011_v38  ;;  %v483_v11 = vpop.f32.mrf.mxu1 }
 0x120   :  { %v361_v57 = vpop.f32.mrf.mxu0  ;;  %680 = vst [vmem:[#allocation7 + $0x98] sm:$0xf] %v794_v8  ;;  %v800_v13 = vpack.c.bf16 %v492_v9, %v492_v9  ;;  %v484_v14 = vadd.f32 %v483_v11, %v1019_v50 }
 0x121   :  { %669 = vst [vmem:[#allocation7 + $0x54] sm:$0xff] %v783_v54  ;;  %v362_v60 = vadd.f32 %v361_v57, %v1013_v39 }
 0x122   :  { %v363_v63 = vpop.f32.mrf.mxu0  ;;  %686 = vst [vmem:[#allocation7 + $0xbc] sm:$0xf] %v800_v13  ;;  %v796_v18 = vpack.c.bf16 %v484_v14, %v484_v14 }
 0x123   :  { %v785_v1 = vpack.c.bf16 %v362_v60, %v360_v59  ;;  %v364_v6 = vadd.f32 %v363_v63, %v1011_v38 }
 0x124   :  { %v365_v4 = vpop.f32.mrf.mxu0  ;;  %682 = vst [vmem:[#allocation7 + $0xa4] sm:$0xf] %v796_v18 }
 0x125   :  { %671 = vst [vmem:[#allocation7 + $0x60] sm:$0xff] %v785_v1  ;;  %v366_v7 = vadd.f32 %v365_v4, %v1013_v39 }
 0x126   :  { %v369_v10 = vpop.f32.mrf.mxu0 }
 0x127   :  { %v787_v12 = vpack.c.bf16 %v366_v7, %v364_v6  ;;  %v370_v16 = vadd.f32 %v369_v10, %v1011_v38 }
 0x128   :  { %v371_v15 = vpop.f32.mrf.mxu0 }
 0x129   :  { %673 = vst [vmem:[#allocation7 + $0x6c] sm:$0xff] %v787_v12  ;;  %v372_v17 = vadd.f32 %v371_v15, %v1013_v39 }
 0x12a   :  { %v373_v19 = vpop.f32.mrf.mxu0 }
 0x12b   :  { %v789_v20 = vpack.c.bf16 %v372_v17, %v370_v16  ;;  %v374_v22 = vadd.f32 %v373_v19, %v1011_v38 }
 0x12c   :  { %v375_v21 = vpop.f32.mrf.mxu0 }
 0x12d   :  { %675 = vst [vmem:[#allocation7 + $0x78] sm:$0xff] %v789_v20  ;;  %v376_v23 = vadd.f32 %v375_v21, %v1013_v39 }
 0x12e   :  { %v379_v24 = vpop.f32.mrf.mxu0 }
 0x12f   :  { %v791_v25 = vpack.c.bf16 %v376_v23, %v374_v22  ;;  %v380_v26 = vadd.f32 %v379_v24, %v1011_v38 }
 0x130   :  { %v381_v50 = vpop.f32.mrf.mxu0 }
 0x131   :  { %677 = vst [vmem:[#allocation7 + $0x84] sm:$0xff] %v791_v25  ;;  %v382_v27 = vadd.f32 %v381_v50, %v1013_v39 }
 0x132   :  { %v383_v28 = vpop.f32.mrf.mxu0 }
 0x133   :  { %v793_v29 = vpack.c.bf16 %v382_v27, %v380_v26  ;;  %v384_v31 = vadd.f32 %v383_v28, %v1011_v38 }
 0x134   :  { %v385_v30 = vpop.f32.mrf.mxu0 }
 0x135   :  { %679 = vst [vmem:[#allocation7 + $0x90] sm:$0xff] %v793_v29  ;;  %v386_v32 = vadd.f32 %v385_v30, %v1013_v39 }
 0x136   :  { %v389_v33 = vpop.f32.mrf.mxu0 }
 0x137   :  { %v795_v34 = vpack.c.bf16 %v386_v32, %v384_v31  ;;  %v390_v36 = vadd.f32 %v389_v33, %v1011_v38 }
 0x138   :  { %v391_v35 = vpop.f32.mrf.mxu0 }
 0x139   :  { %681 = vst [vmem:[#allocation7 + $0x9c] sm:$0xff] %v795_v34  ;;  %v392_v37 = vadd.f32 %v391_v35, %v1013_v39 }
 0x13a   :  { %v393_v40 = vpop.f32.mrf.mxu0 }
 0x13b   :  { %v797_v41 = vpack.c.bf16 %v392_v37, %v390_v36  ;;  %v394_v43 = vadd.f32 %v393_v40, %v1011_v38 }
 0x13c   :  { %v395_v42 = vpop.f32.mrf.mxu0 }
 0x13d   :  { %683 = vst [vmem:[#allocation7 + $0xa8] sm:$0xff] %v797_v41  ;;  %v396_v44 = vadd.f32 %v395_v42, %v1013_v39 }
 0x13f   :  { %v799_v45 = vpack.c.bf16 %v396_v44, %v394_v43 }
 0x141   :  { %685 = vst [vmem:[#allocation7 + $0xb4] sm:$0xff] %v799_v45 }
 0x142   :  { %948 = shalt.err (!%p945_p0)
}
 0x143   :  { %698 = dma.vmem_to_hbm [thread:$0]  %s693_s26, 3072, %s1074_s3, [#allocation4], %s967_s22, %s967_s22, %s968_s23  }
 0x144   :  { %961 = dma.done.wait [#allocation4], 3072  }
 0x145   :  { %962 = vsyncadd [#allocation4], 4294964224 }
 0x146   :  { %702 = vsyncpa [#allocation3], 1 }
 0x147   :  { %703 = vsyncpa [#allocation6], 1 }
 0x148   :  { %704 = vsyncpa [#allocation4], 1 }

</bundles_post_ra>
